<compile_context>
chip_gen: v5e
topology: v5e:2x2
jax: 0.10.0
libtpu: 0.0.40
codegen_flags: <defaults>
</compile_context>

<pallas_src>
import jax
import jax.numpy as jnp
from jax.experimental import pallas as pl
from jax.experimental.pallas import tpu as pltpu


def _round_up(n, m):
    return ((n + m - 1) // m) * m


def _cdiv(a, b):
    return -(-a // b)


def _phys_vmem_bytes():
    try:
        return int(pltpu.get_tpu_info().vmem_capacity_bytes)
    except Exception:
        return 128 << 20  # v5e/v6e default


def _choose_batch_tile(B, phys_vmem):
    """Rows per batch tile. >=2 tiles on v7x (2 TCs) for B>16; bigger tiles on
    128 MiB parts; padding waste bounded by balancing B over the tiles."""
    if phys_vmem <= (64 << 20):          # v7x-like
        cap = 256
        min_tiles = 2 if B > 16 else 1
    else:                                 # v5e / v6e
        cap = 512
        min_tiles = 1
    n_tiles = max(min_tiles, _cdiv(B, cap))
    return _round_up(_cdiv(B, n_tiles), 8)


def _choose_k_tile(D, H, w1_budget_bytes):
    """In-feature tile. Keep w1 fully resident when it fits (single K step),
    otherwise stream (TK, H) bf16 blocks (double-buffered)."""
    if D % 128 != 0 or D * H * 2 <= w1_budget_bytes:
        return D
    for tk in (4096, 2048, 1024, 512, 256, 128):
        if D % tk == 0 and 2 * tk * H * 2 <= w1_budget_bytes:
            return tk
    return 128


def _const_spec(shape):
    """BlockSpec with a constant index_map, single-buffered (resident)."""
    idx = lambda i, k: (0,) * len(shape)
    try:
        return pl.BlockSpec(shape, idx, pipeline_mode=pl.Buffered(1))
    except TypeError:  # older BlockSpec without pipeline_mode kwarg
        return pl.BlockSpec(shape, idx)


def mlp_kernel(x_ref, w1_ref, b1_ref, w2_ref, b2_ref, o_ref, acc_ref):
    k = pl.program_id(1)

    @pl.when(k == 0)
    def _init():
        acc_ref[...] = jnp.zeros_like(acc_ref)

    # lin1 partial: (TB, TK) f32 tile cast to bf16 in-kernel, f32 MXU accum.
    acc_ref[...] += jnp.dot(
        x_ref[...].astype(jnp.bfloat16), w1_ref[...],
        preferred_element_type=jnp.float32)

    @pl.when(k == pl.num_programs(1) - 1)
    def _finalize():
        h = jax.nn.sigmoid(acc_ref[...] + b1_ref[...])          # f32 VPU/EUP
        o = jnp.dot(h.astype(jnp.bfloat16), w2_ref[...],
                    preferred_element_type=jnp.float32)
        o_ref[...] = (o + b2_ref[...]).astype(o_ref.dtype)      # 128-lane store


def prepare_params(w1, b1, w2, b2):
    """One-time parameter conversion (do NOT repeat per call):
    bf16 weights, f32 biases, lin2 output zero-padded to 128 lanes."""
    H = w1.shape[1]
    O = w2.shape[1]
    OP = _round_up(max(O, 128), 128)
    w1b = w1.astype(jnp.bfloat16)                                  # (D, H)
    w2b = jnp.pad(w2.astype(jnp.bfloat16), ((0, 0), (0, OP - O)))  # (H, OP)
    b1f = b1.reshape(1, H).astype(jnp.float32)                     # (1, H)
    b2f = jnp.pad(b2.astype(jnp.float32), (0, OP - O)).reshape(1, OP)
    return (w1b, b1f, w2b, b2f, O)


def simple_mlp_forward(x, params):
    """x: (B, ...) float32; params: output of prepare_params. Returns (B, 10) f32."""
    w1b, b1f, w2b, b2f, O = params
    B = x.shape[0]
    x2d = x.reshape(B, -1)                 # == x.view(B, -1), stays f32
    D = x2d.shape[1]
    H = w1b.shape[1]
    OP = w2b.shape[1]
    assert w1b.shape[0] == D, "in_features mismatch"

    phys_vmem = _phys_vmem_bytes()

    TB = _choose_batch_tile(B, phys_vmem)
    B_pad = _round_up(B, TB)
    xp = x2d if B_pad == B else jnp.pad(x2d, ((0, B_pad - B), (0, 0)))

    w1_budget = (24 << 20) if phys_vmem <= (64 << 20) else (48 << 20)
    TK = _choose_k_tile(D, H, w1_budget)
    NK = D // TK

    grid = (B_pad // TB, NK)

    # x tile streams over (batch, k); w1 streams over k (or is resident when
    # NK == 1); b1/w2/b2 are resident, single-buffered.
    x_spec = pl.BlockSpec((TB, TK), lambda i, k: (i, k))
    if NK == 1:
        w1_spec = _const_spec((TK, H))
    else:
        w1_spec = pl.BlockSpec((TK, H), lambda i, k: (k, 0))
    in_specs = [x_spec, w1_spec, _const_spec((1, H)),
                _const_spec((H, OP)), _const_spec((1, OP))]
    out_spec = pl.BlockSpec((TB, OP), lambda i, k: (i, 0))

    # VMEM accounting with real buffer counts.
    w1_bufs = 1 if NK == 1 else 2
    vmem_needed = (2 * TB * TK * 4          # x tiles, f32, double-buffered
                   + w1_bufs * TK * H * 2   # w1 blocks, bf16
                   + H * 4 + OP * 4         # b1, b2 (single buffer)
                   + H * OP * 2             # w2 (single buffer)
                   + 2 * TB * OP * 4        # out tiles, f32, double-buffered
                   + TB * H * 4)            # f32 accumulator scratch
    vmem_ceiling = max(24 << 20, phys_vmem - (16 << 20))  # headroom for Mosaic
    vmem_limit = int(min(max(32 << 20, vmem_needed + (4 << 20)), vmem_ceiling))

    cost = pl.CostEstimate(
        flops=2 * B_pad * D * H + 2 * B_pad * H * OP,
        transcendentals=B_pad * H,
        bytes_accessed=(B_pad * D * 4 + D * H * 2 + H * OP * 2
                        + H * 4 + OP * 4 + B_pad * OP * 4),
    )

    out = pl.pallas_call(
        mlp_kernel,
        out_shape=jax.ShapeDtypeStruct((B_pad, OP), jnp.float32),
        grid_spec=pltpu.PrefetchScalarGridSpec(
            num_scalar_prefetch=0,
            grid=grid,
            in_specs=in_specs,
            out_specs=out_spec,
            scratch_shapes=[pltpu.VMEM((TB, H), jnp.float32)],
        ),
        compiler_params=pltpu.CompilerParams(
            dimension_semantics=("parallel", "arbitrary"),
            vmem_limit_bytes=vmem_limit,
        ),
        cost_estimate=cost,
    )(xp, w1b, b1f, w2b, b2f)

    return out[:B, :O]


def init_params(key, num_input_nodes, num_hidden_nodes, num_out=10):
    """nn.Linear-style U(-1/sqrt(fan_in), 1/sqrt(fan_in)) init; weights stored
    pre-transposed as (in_features, out_features)."""
    k1, k2, k3, k4 = jax.random.split(key, 4)
    lim1 = 1.0 / jnp.sqrt(num_input_nodes)
    lim2 = 1.0 / jnp.sqrt(num_hidden_nodes)
    w1 = jax.random.uniform(k1, (num_input_nodes, num_hidden_nodes),
                            jnp.float32, -lim1, lim1)
    b1 = jax.random.uniform(k2, (num_hidden_nodes,), jnp.float32, -lim1, lim1)
    w2 = jax.random.uniform(k3, (num_hidden_nodes, num_out),
                            jnp.float32, -lim2, lim2)
    b2 = jax.random.uniform(k4, (num_out,), jnp.float32, -lim2, lim2)
    return w1, b1, w2, b2


if __name__ == "__main__":
    key = jax.random.PRNGKey(0)
    kx, kp = jax.random.split(key)

    # Small image-like input: batch=8, channels=4, spatial=8x8 -> D = 256
    B, C, Hs, Ws = 8, 4, 8, 8
    num_input_nodes = C * Hs * Ws        # 256
    num_hidden_nodes = 128

    x = jax.random.normal(kx, (B, C, Hs, Ws), jnp.float32)
    w1, b1, w2, b2 = init_params(kp, num_input_nodes, num_hidden_nodes)
    params = prepare_params(w1, b1, w2, b2)   # one-time bf16 conversion/padding

    out = simple_mlp_forward(x, params)
    out = jax.block_until_ready(out)

    # Pure-JAX f32 reference (kernel uses bf16 matmul operands -> looser tol).
    xf = x.reshape(B, -1)
    ref = jax.nn.sigmoid(xf @ w1 + b1) @ w2 + b2
    assert out.shape == (B, 10)
    assert jnp.allclose(out, ref, atol=5e-2, rtol=5e-2), (
        float(jnp.max(jnp.abs(out - ref))))

    print("KERNEL_OK")
</pallas_src>

<mosaic_0001>
module attributes {stable_mosaic.version = 11 : i64} {
  func.func @mlp_kernel(%arg0: i32, %arg1: i32, %arg2: memref<8x256xf32, #tpu.memory_space<vmem>>, %arg3: memref<256x128xbf16, #tpu.memory_space<vmem>>, %arg4: memref<1x128xf32, #tpu.memory_space<vmem>>, %arg5: memref<128x128xbf16, #tpu.memory_space<vmem>>, %arg6: memref<1x128xf32, #tpu.memory_space<vmem>>, %arg7: memref<8x128xf32, #tpu.memory_space<vmem>>, %arg8: memref<8x128xf32, #tpu.memory_space<vmem>>) attributes {dimension_semantics = [#tpu.dimension_semantics<parallel>, #tpu.dimension_semantics<arbitrary>], iteration_bounds = array<i64: 1, 1>, scalar_prefetch = 0 : i64, scratch_operands = 1 : i64, tpu.core_type = #tpu.core_type<tc>, window_params = [{transform_indices = @transform_0, window_bounds = array<i64: 8, 256>}, {pipeline_mode = #tpu.pipeline_mode<synchronous>, transform_indices = @transform_1, window_bounds = array<i64: 256, 128>}, {pipeline_mode = #tpu.pipeline_mode<synchronous>, transform_indices = @transform_2, window_bounds = array<i64: 1, 128>}, {pipeline_mode = #tpu.pipeline_mode<synchronous>, transform_indices = @transform_3, window_bounds = array<i64: 128, 128>}, {pipeline_mode = #tpu.pipeline_mode<synchronous>, transform_indices = @transform_4, window_bounds = array<i64: 1, 128>}, {transform_indices = @transform_5, window_bounds = array<i64: 8, 128>}]} {
    %c0_i32 = arith.constant 0 : i32
    %0 = arith.cmpi eq, %arg1, %c0_i32 : i32
    %1 = arith.extui %0 : i1 to i32
    %c0_i32_0 = arith.constant 0 : i32
    %2 = arith.cmpi ne, %1, %c0_i32_0 : i32
    scf.if %2 {
      %cst_10 = arith.constant 0.000000e+00 : f32
      %13 = vector.broadcast %cst_10 : f32 to vector<8x128xf32>
      %c0_11 = arith.constant 0 : index
      %c0_12 = arith.constant 0 : index
      %14 = vector.load %arg8[%c0_11, %c0_12] : memref<8x128xf32, #tpu.memory_space<vmem>>, vector<8x128xf32>
      tpu.vector_store %arg8[%c0_11, %c0_12], %13 {strides = array<i32>} : memref<8x128xf32, #tpu.memory_space<vmem>>, vector<8x128xf32>,
    } else {
    }
    %c0 = arith.constant 0 : index
    %c0_1 = arith.constant 0 : index
    %3 = vector.load %arg8[%c0, %c0_1] : memref<8x128xf32, #tpu.memory_space<vmem>>, vector<8x128xf32>
    %c0_2 = arith.constant 0 : index
    %c0_3 = arith.constant 0 : index
    %4 = vector.load %arg2[%c0_2, %c0_3] : memref<8x256xf32, #tpu.memory_space<vmem>>, vector<8x256xf32>
    %5 = arith.truncf %4 : vector<8x256xf32> to vector<8x256xbf16>
    %c0_4 = arith.constant 0 : index
    %c0_5 = arith.constant 0 : index
    %6 = vector.load %arg3[%c0_4, %c0_5] : memref<256x128xbf16, #tpu.memory_space<vmem>>, vector<256x128xbf16>
    %cst = arith.constant dense<0.000000e+00> : vector<8x128xf32>
    %7 = tpu.matmul %5, %6, %cst {dimension_numbers = #tpu.dot_dimension_numbers<[1], [0], [0], [1], [0, 0, 1, 1], [], []>} : vector<8x256xbf16>, vector<256x128xbf16>, vector<8x128xf32> -> vector<8x128xf32>
    %8 = arith.addf %3, %7 : vector<8x128xf32>
    %c0_6 = arith.constant 0 : index
    %c0_7 = arith.constant 0 : index
    %9 = vector.load %arg8[%c0_6, %c0_7] : memref<8x128xf32, #tpu.memory_space<vmem>>, vector<8x128xf32>
    tpu.vector_store %arg8[%c0_6, %c0_7], %8 {strides = array<i32>} : memref<8x128xf32, #tpu.memory_space<vmem>>, vector<8x128xf32>,
    %c0_i32_8 = arith.constant 0 : i32
    %10 = arith.cmpi eq, %arg1, %c0_i32_8 : i32
    %11 = arith.extui %10 : i1 to i32
    %c0_i32_9 = arith.constant 0 : i32
    %12 = arith.cmpi ne, %11, %c0_i32_9 : i32
    scf.if %12 {
      %c0_10 = arith.constant 0 : index
      %c0_11 = arith.constant 0 : index
      %13 = vector.load %arg8[%c0_10, %c0_11] : memref<8x128xf32, #tpu.memory_space<vmem>>, vector<8x128xf32>
      %c0_12 = arith.constant 0 : index
      %c0_13 = arith.constant 0 : index
      %14 = vector.load %arg4[%c0_12, %c0_13] : memref<1x128xf32, #tpu.memory_space<vmem>>, vector<1x128xf32>
      %15 = vector.broadcast %14 : vector<1x128xf32> to vector<8x128xf32>
      %16 = arith.addf %13, %15 : vector<8x128xf32>
      %17 = arith.negf %16 : vector<8x128xf32>
      %18 = math.exp %17 : vector<8x128xf32>
      %cst_14 = arith.constant 1.000000e+00 : f32
      %19 = vector.broadcast %cst_14 : f32 to vector<8x128xf32>
      %20 = arith.addf %19, %18 : vector<8x128xf32>
      %21 = arith.divf %19, %20 : vector<8x128xf32>
      %22 = arith.truncf %21 : vector<8x128xf32> to vector<8x128xbf16>
      %c0_15 = arith.constant 0 : index
      %c0_16 = arith.constant 0 : index
      %23 = vector.load %arg5[%c0_15, %c0_16] : memref<128x128xbf16, #tpu.memory_space<vmem>>, vector<128x128xbf16>
      %cst_17 = arith.constant dense<0.000000e+00> : vector<8x128xf32>
      %24 = tpu.matmul %22, %23, %cst_17 {dimension_numbers = #tpu.dot_dimension_numbers<[1], [0], [0], [1], [0, 0, 1, 1], [], []>} : vector<8x128xbf16>, vector<128x128xbf16>, vector<8x128xf32> -> vector<8x128xf32>
      %c0_18 = arith.constant 0 : index
      %c0_19 = arith.constant 0 : index
      %25 = vector.load %arg6[%c0_18, %c0_19] : memref<1x128xf32, #tpu.memory_space<vmem>>, vector<1x128xf32>
      %26 = vector.broadcast %25 : vector<1x128xf32> to vector<8x128xf32>
      %27 = arith.addf %24, %26 : vector<8x128xf32>
      %c0_20 = arith.constant 0 : index
      %c0_21 = arith.constant 0 : index
      %28 = vector.load %arg7[%c0_20, %c0_21] : memref<8x128xf32, #tpu.memory_space<vmem>>, vector<8x128xf32>
      tpu.vector_store %arg7[%c0_20, %c0_21], %27 {strides = array<i32>} : memref<8x128xf32, #tpu.memory_space<vmem>>, vector<8x128xf32>,
    } else {
    }
    return
  }
  func.func @transform_0(%arg0: i32, %arg1: i32) -> (i32, i32) {
    %c0_i32 = arith.constant 0 : i32
    return %arg0, %arg1 : i32, i32
  }
  func.func @transform_1(%arg0: i32, %arg1: i32) -> (i32, i32) {
    %c0_i32 = arith.constant 0 : i32
    %c0_i32_0 = arith.constant 0 : i32
    %c0_i32_1 = arith.constant 0 : i32
    return %c0_i32, %c0_i32_0 : i32, i32
  }
  func.func @transform_2(%arg0: i32, %arg1: i32) -> (i32, i32) {
    %c0_i32 = arith.constant 0 : i32
    %c0_i32_0 = arith.constant 0 : i32
    %c0_i32_1 = arith.constant 0 : i32
    return %c0_i32, %c0_i32_0 : i32, i32
  }
  func.func @transform_3(%arg0: i32, %arg1: i32) -> (i32, i32) {
    %c0_i32 = arith.constant 0 : i32
    %c0_i32_0 = arith.constant 0 : i32
    %c0_i32_1 = arith.constant 0 : i32
    return %c0_i32, %c0_i32_0 : i32, i32
  }
  func.func @transform_4(%arg0: i32, %arg1: i32) -> (i32, i32) {
    %c0_i32 = arith.constant 0 : i32
    %c0_i32_0 = arith.constant 0 : i32
    %c0_i32_1 = arith.constant 0 : i32
    return %c0_i32, %c0_i32_0 : i32, i32
  }
  func.func @transform_5(%arg0: i32, %arg1: i32) -> (i32, i32) {
    %c0_i32 = arith.constant 0 : i32
    %c0_i32_0 = arith.constant 0 : i32
    return %arg0, %c0_i32 : i32, i32
  }
}

</mosaic_0001>

<bundles_post_ra>
// kernel: tpu_custom_call.1
= control target key start
LH: loop header
LB: loop body
LE: loop exit
PB: predicated region body
PF: predicated region fallthrough
CT: control target
= control target key end

     0   :  { %10 = vsyncpa [#allocation4], 0  ;;  %s650_s0 = inlined_call_operand.hbm [shape: f32[8,256], index: 0, kind: input, shape index: {}]   ;;  %s651_s1 = inlined_call_operand.hbm [shape: bf16[256,128], index: 1, kind: input, shape index: {}]   ;;  %s652_s2 = inlined_call_operand.vmem [shape: f32[1,128], index: 2, kind: input, shape index: {}]   ;;  %s653_s3 = inlined_call_operand.hbm [shape: bf16[128,128], index: 3, kind: input, shape index: {}]   ;;  %s654_s4 = inlined_call_operand.vmem [shape: f32[1,128], index: 4, kind: input, shape index: {}]   ;;  %s655_s5 = inlined_call_operand.hbm [shape: f32[8,128], index: 5, kind: output, shape index: {}]  }
   0x1   :  { %11 = vsyncpa [#allocation7], 0  ;;  %s28_s20 = sshll.u32 %s651_s1, 4  ;;  %s29_s20 = int_to_ptr.hbm [resolvable:$true] %s28_s20 }
   0x2   :  { %12 = vsyncpa [#allocation5], 0  ;;  %s596_s21 = smov [#allocation6]   ;;  %s18_s25 = sshll.u32 %s650_s0, 4  ;;  %s19_s25 = int_to_ptr.hbm [resolvable:$true] %s18_s25 }
   0x3   :  { %s30_s22 = sshll.u32 %s596_s21, 4  ;;  %s597_s26 = smov 64   ;;  %s31_s22 = int_to_ptr.vmem [resolvable:$true] %s30_s22 }
   0x4   :  { %s598_s27 = smov 4   ;;  %s599_s28 = smov [#allocation3]  }
   0x5   :  { %36 = dma.hbm_to_vmem [thread:$0]  %s29_s20, 2048, %s31_s22, [#allocation7], %s597_s26, %s597_s26, %s598_s27  }
   0x6   :  { %s20_s29 = sshll.u32 %s599_s28, 4  ;;  %s43_s7 = sshll.u32 %s653_s3, 4  ;;  %s21_s29 = int_to_ptr.vmem [resolvable:$true] %s20_s29  ;;  %s44_s7 = int_to_ptr.hbm [resolvable:$true] %s43_s7 }
   0x7   :  { %23 = dma.hbm_to_vmem [thread:$0]  %s19_s25, 256, %s21_s29, [#allocation4]  }
   0x8   :  { %s600_s1 = smov [#allocation8]  }
   0x9   :  { %s45_s8 = sshll.u32 %s600_s1, 4  ;;  %s46_s8 = int_to_ptr.vmem [resolvable:$true] %s45_s8 }
   0xa   :  { %51 = dma.hbm_to_vmem [thread:$0]  %s44_s7, 1024, %s46_s8, [#allocation7], %s597_s26, %s597_s26, %s598_s27  }
   0xb   :  { %590 = dma.done.wait [#allocation4], 256  }
   0xc   :  { %591 = vsyncadd [#allocation4], 4294967040 }
   0xd   :  { %592 = dma.done.wait [#allocation7], 3072  }
   0xe   :  { %593 = vsyncadd [#allocation7], 4294964224  ;;  %v465_v0 = vld [vmem:[#allocation6 + $0x38] sm:$0xff]  ;;  %v464_v2 = vld [vmem:[#allocation6 + $0x30] sm:$0xff]  ;;  %s601_s10 = smov [#allocation9]   ;;  %s350_s14 = sshll.u32 %s655_s5, 4  ;;  %s351_s14 = int_to_ptr.hbm [resolvable:$true] %s350_s14 }
   0xf   :  { %v473_v1 = vld [vmem:[#allocation6 + $0x78] sm:$0xff]  ;;  %204 = vmatpush.bf16.msra.mxu0 %v465_v0  ;;  %v472_v3 = vld [vmem:[#allocation6 + $0x70] sm:$0xff]  ;;  %v463_v4 = vld [vmem:[#allocation6 + $0x28] sm:$0xff]  ;;  %s348_s11 = sshll.u32 %s601_s10, 4  ;;  %s349_s11 = int_to_ptr.vmem [resolvable:$true] %s348_s11 }
  0x10   :  { %217 = vmatpush.bf16.msra.mxu1 %v473_v1  ;;  %v471_v5 = vld [vmem:[#allocation6 + $0x68] sm:$0xff]  ;;  %v462_v6 = vld [vmem:[#allocation6 + $0x20] sm:$0xff]  ;;  %v461_v8 = vld [vmem:[#allocation6 + $0x18] sm:$0xff] }
  0x11   :  { %v470_v7 = vld [vmem:[#allocation6 + $0x60] sm:$0xff]  ;;  %v469_v9 = vld [vmem:[#allocation6 + $0x58] sm:$0xff]  ;;  %v460_v10 = vld [vmem:[#allocation6 + $0x10] sm:$0xff] }
  0x12   :  { %v468_v11 = vld [vmem:[#allocation6 + $0x50] sm:$0xff]  ;;  %v459_v12 = vld [vmem:[#allocation6 + $0x8] sm:$0xff]  ;;  %v458_v14 = vld [vmem:[#allocation6] sm:$0xff] }
  0x13   :  { %205 = vmatpush.bf16.msra.mxu0 %v464_v2  ;;  %v467_v13 = vld [vmem:[#allocation6 + $0x48] sm:$0xff]  ;;  %v466_v15 = vld [vmem:[#allocation6 + $0x40] sm:$0xff]  ;;  %v72_v16 = vld [vmem:[#allocation3] sm:$0xff] }
  0x14   :  { %218 = vmatpush.bf16.msra.mxu1 %v472_v3  ;;  %v73_v17 = vld [vmem:[#allocation3 + $0x8] sm:$0xff]  ;;  %v74_v18 = vpack.c.bf16 %v72_v16, %v72_v16  ;;  %v480_v21 = vld [vmem:[#allocation8 + $0x30] sm:$0xff]  ;;  %v479_v22 = vld [vmem:[#allocation8 + $0x28] sm:$0xff] }
  0x15   :  { %v75_v19 = vpack.c.bf16 %v73_v17, %v73_v17  ;;  %v481_v20 = vld [vmem:[#allocation8 + $0x38] sm:$0xff]  ;;  %v478_v23 = vld [vmem:[#allocation8 + $0x20] sm:$0xff]  ;;  %v476_v25 = vld [vmem:[#allocation8 + $0x10] sm:$0xff] }
  0x16   :  { %329 = vmatpush.bf16.msra.mxu2 %v481_v20  ;;  %v477_v24 = vld [vmem:[#allocation8 + $0x18] sm:$0xff]  ;;  %v475_v26 = vld [vmem:[#allocation8 + $0x8] sm:$0xff]  ;;  %v474_v27 = vld [vmem:[#allocation8] sm:$0xff] }
  0x17   :  { %206 = vmatpush.bf16.msra.mxu0 %v463_v4  ;;  %v488_v28 = vld [vmem:[%s652_s2] ss:$0 sm:$0xff] }
  0x18   :  { %219 = vmatpush.bf16.msra.mxu1 %v471_v5  ;;  %v489_v49 = vld [vmem:[%s654_s4] ss:$0 sm:$0xff] }
  0x1a   :  { %330 = vmatpush.bf16.msra.mxu2 %v480_v21 }
  0x1b   :  { %207 = vmatpush.bf16.msra.mxu0 %v462_v6 }
  0x1c   :  { %220 = vmatpush.bf16.msra.mxu1 %v470_v7 }
  0x1e   :  { %331 = vmatpush.bf16.msra.mxu2 %v479_v22 }
  0x1f   :  { %208 = vmatpush.bf16.msra.mxu0 %v461_v8 }
  0x20   :  { %221 = vmatpush.bf16.msra.mxu1 %v469_v9 }
  0x22   :  { %332 = vmatpush.bf16.msra.mxu2 %v478_v23 }
  0x23   :  { %209 = vmatpush.bf16.msra.mxu0 %v460_v10 }
  0x24   :  { %222 = vmatpush.bf16.msra.mxu1 %v468_v11 }
  0x26   :  { %333 = vmatpush.bf16.msra.mxu2 %v477_v24 }
  0x27   :  { %210 = vmatpush.bf16.msra.mxu0 %v459_v12 }
  0x28   :  { %223 = vmatpush.bf16.msra.mxu1 %v467_v13 }
  0x2a   :  { %334 = vmatpush.bf16.msra.mxu2 %v476_v25 }
  0x2b   :  { %211 = vmatpush.bf16.msra.mxu0 %v458_v14 }
  0x2c   :  { %224 = vmatpush.bf16.msra.mxu1 %v466_v15 }
  0x2e   :  { %212 = vmatmul.bf16.vlgmr.msra.gmra.mxu0 %v74_v18  ;;  %335 = vmatpush.bf16.msra.mxu2 %v475_v26 }
  0x2f   :  { %225 = vmatmul.bf16.vlgmr.msra.gmra.mxu1 %v75_v19 }
  0x32   :  { %336 = vmatpush.bf16.msra.mxu2 %v474_v27 }
  0xab   :  { %v213_v29 = vpop.f32.mrf.mxu0 }
  0xac   :  { %v226_v30 = vpop.f32.mrf.mxu1 }
  0xad   :  { %v227_v31 = vadd.f32 %v226_v30, %v213_v29 }
  0xaf   :  { %v240_v32 = vadd.f32 %v488_v28, %v227_v31 }
  0xb1   :  { %v425_v33 = vmul.f32 -1.442695, %v240_v32 }
  0xb3   :  { %490 = vpow2.f32 %v425_v33  ;;  %v215_v34 = vpop.f32.mrf.mxu0 }
  0xb4   :  { %v228_v35 = vpop.f32.mrf.mxu1 }
  0xb9   :  { %v491_v36 = vpop.eup %490 }
  0xba   :  { %v244_v37 = vadd.f32 1.0, %v491_v36 }
  0xbc   :  { %492 = vrcp.f32 %v244_v37  ;;  %v256_v41 = vand.u32 2147483648, %v244_v37  ;;  %v254_v43 = vand.u32 2147483647, %v244_v37  ;;  %vm250_vm1 = vweird.f32 %v244_v37 }
  0xbe   :  { %v257_v45 = vor.u32 1.1754944e-38, %v256_v41  ;;  %vm255_vm3 = vcmp.eq.f32.partialorder %v254_v43, 8.507059e+37 }
  0xc2   :  { %v493_v38 = vpop.eup %492 }
  0xc3   :  { %v246_v39 = vmul.f32 %v493_v38, %v244_v37  ;;  %vm251_vm0 = vweird.f32 %v493_v38 }
  0xc4   :  { %vm252_vm2 = vmor %vm250_vm1, %vm251_vm0 }
  0xc5   :  { %v247_v40 = vsub.f32 1.0, %v246_v39 }
  0xc7   :  { %v248_v42 = vmul.f32 %v493_v38, %v247_v40 }
  0xc9   :  { %v249_v44 = vadd.f32 %v493_v38, %v248_v42 }
  0xcb   :  { %v253_v46 = vsel %vm252_vm2, %v493_v38, %v249_v44 }
  0xcc   :  { %v258_v47 = vsel %vm255_vm3, %v257_v45, %v253_v46 }
  0xcd   :  { %v260_v48 = vpack.c.bf16 %v258_v47, %v258_v47 }
  0xcf   :  { %337 = vmatmul.bf16.vlgmr.msra.gmra.mxu2 %v260_v48 }
 0x152   :  { %v338_v50 = vpop.f32.mrf.mxu2 }
 0x153   :  { %v339_v51 = vadd.f32 %v489_v49, %v338_v50 }
 0x155   :  { %342 = vst [vmem:[#allocation9] sm:$0xff] %v339_v51 }
 0x156   :  { %353 = dma.vmem_to_hbm [thread:$0]  %s349_s11, 128, %s351_s14, [#allocation5]  }
 0x15a   :  { %v340_v52 = vpop.f32.mrf.mxu2 }
 0x15b   :  { %594 = dma.done.wait [#allocation5], 128  }
 0x15c   :  { %595 = vsyncadd [#allocation5], 4294967168 }
 0x15d   :  { %358 = vsyncpa [#allocation4], 1 }
 0x15e   :  { %359 = vsyncpa [#allocation7], 1 }
 0x15f   :  { %360 = vsyncpa [#allocation5], 1 }

</bundles_post_ra>
